<compile_context>
chip_gen: v7x
topology: tpu7x:2x2x1
jax: 0.10.0
libtpu: 0.0.40
codegen_flags: <defaults>
</compile_context>

<pallas_src>
import jax
import jax.numpy as jnp
from jax.experimental import pallas as pl
from jax.experimental.pallas import tpu as pltpu


def _arange_flat_kernel(past_ref, out_ref):
    # Fallback path for ragged / small q_len.
    # past_ref: SMEM (1, 1) int32 scalar offset; out_ref: VMEM (1, q_len) int32.
    offset = past_ref[0, 0]  # single scalar read, hoisted
    q_len = out_ref.shape[1]
    iota = jax.lax.broadcasted_iota(jnp.int32, (1, q_len), dimension=1)
    out_ref[...] = iota + offset


def _make_dense_kernel(total_cols: int, block_cols: int):
    """Sublane/lane-dense kernel: writes an (8, block_cols) int32 tile whose
    row-major flatten equals arange(q_len) + offset."""

    def _kernel(past_ref, out_ref):
        offset = past_ref[0, 0]  # single scalar read, hoisted (SMEM -> sreg)
        base = offset + pl.program_id(0) * block_cols
        row = jax.lax.broadcasted_iota(jnp.int32, (8, block_cols), 0) * total_cols
        col = jax.lax.broadcasted_iota(jnp.int32, (8, block_cols), 1)
        out_ref[...] = row + col + base

    return _kernel


def arange_forward(hidden_states: jax.Array, past_k_seq_len: jax.Array):
    """Mirrors Arange.forward.

    hidden_states : (bsz, q_len, hidden)  -- only its shape is consumed
    past_k_seq_len: (1, 1) integer scalar offset
    returns (position_ids (1, q_len) int32, past_k_seq_len unchanged)
    """
    _, q_len, _ = hidden_states.shape

    # Avoid a standalone convert dispatch when the input is already int32.
    if past_k_seq_len.dtype == jnp.int32:
        past_i32 = past_k_seq_len
    else:
        past_i32 = past_k_seq_len.astype(jnp.int32)

    if q_len % 1024 == 0:
        # Dense path: (8, cols) output, cols is a multiple of 128 so every
        # store is an unmasked vst.  Row-major reshape to (1, q_len) is free.
        cols = q_len // 8
        block_cols = cols
        # Only tile for very large q_len (keeps blocks well under the VMEM
        # scoped limit, and lets the parallel axis split stores across cores).
        for cand in (32768, 16384, 8192):
            if cols > cand and cols % cand == 0:
                block_cols = cand
                break
        num_blocks = cols // block_cols

        dense = pl.pallas_call(
            _make_dense_kernel(cols, block_cols),
            out_shape=jax.ShapeDtypeStruct((8, cols), jnp.int32),
            grid=(num_blocks,),
            in_specs=[pl.BlockSpec(memory_space=pltpu.MemorySpace.SMEM)],
            out_specs=pl.BlockSpec((8, block_cols), lambda j: (0, j)),
            compiler_params=pltpu.CompilerParams(
                dimension_semantics=("parallel",)),
        )(past_i32)
        position_ids = dense.reshape(1, q_len)
    else:
        # Ragged / small q_len fallback: a single (1, q_len) block.  At these
        # sizes the op is launch-overhead bound, so no tiling is warranted.
        position_ids = pl.pallas_call(
            _arange_flat_kernel,
            out_shape=jax.ShapeDtypeStruct((1, q_len), jnp.int32),
            in_specs=[pl.BlockSpec(memory_space=pltpu.MemorySpace.SMEM)],
            out_specs=pl.BlockSpec((1, q_len), lambda: (0, 0)),
        )(past_i32)

    return position_ids, past_k_seq_len


if __name__ == "__main__":
    key = jax.random.PRNGKey(0)

    # Small shapes implied by the module (fallback path).
    bsz, q_len, hidden = 2, 8, 32
    k1, _ = jax.random.split(key)
    hidden_states = jax.random.normal(k1, (bsz, q_len, hidden), dtype=jnp.float32)
    past_k_seq_len = jnp.array([[5]], dtype=jnp.int32)  # (1, 1)

    position_ids, past_out = arange_forward(hidden_states, past_k_seq_len)
    jax.block_until_ready(position_ids)
    jax.block_until_ready(past_out)

    expected = jnp.arange(0, q_len, dtype=jnp.int32)[None, :] + past_k_seq_len[:, 0]
    assert position_ids.shape == (1, q_len), position_ids.shape
    assert jnp.array_equal(position_ids, expected), (position_ids, expected)
    assert jnp.array_equal(past_out, past_k_seq_len)

    # Also exercise the sublane/lane-dense path (q_len multiple of 1024).
    q_len2 = 1024
    hidden_states2 = jnp.zeros((1, q_len2, hidden), dtype=jnp.float32)
    past2 = jnp.array([[7]], dtype=jnp.int32)
    pos2, past2_out = arange_forward(hidden_states2, past2)
    jax.block_until_ready(pos2)
    expected2 = jnp.arange(0, q_len2, dtype=jnp.int32)[None, :] + past2[:, 0]
    assert pos2.shape == (1, q_len2), pos2.shape
    assert jnp.array_equal(pos2, expected2)
    assert jnp.array_equal(past2_out, past2)

    print("KERNEL_OK")
</pallas_src>

<mosaic_0001>
module attributes {stable_mosaic.version = 11 : i64} {
  func.func @_arange_flat_kernel(%arg0: memref<1x1xi32, #tpu.memory_space<smem>>, %arg1: memref<1x8xi32, #tpu.memory_space<vmem>>) attributes {dimension_semantics = [], scalar_prefetch = 0 : i64, scratch_operands = 0 : i64, tpu.core_type = #tpu.core_type<tc>} {
    %c0 = arith.constant 0 : index
    %c0_0 = arith.constant 0 : index
    %0 = memref.load %arg0[%c0, %c0_0] : memref<1x1xi32, #tpu.memory_space<smem>>
    %1 = tpu.iota {dimensions = array<i32: 1>} : vector<1x8xi32>
    %2 = vector.broadcast %0 : i32 to vector<1x8xi32>
    %3 = arith.addi %1, %2 : vector<1x8xi32>
    %c0_1 = arith.constant 0 : index
    %c0_2 = arith.constant 0 : index
    %4 = vector.load %arg1[%c0_1, %c0_2] : memref<1x8xi32, #tpu.memory_space<vmem>>, vector<1x8xi32>
    tpu.vector_store %arg1[%c0_1, %c0_2], %3 {strides = array<i32>} : memref<1x8xi32, #tpu.memory_space<vmem>>, vector<1x8xi32>,
    return
  }
}

</mosaic_0001>

<bundles_post_ra>
// kernel: tpu_custom_call.1
= control target key start
LH: loop header
LB: loop body
LE: loop exit
PB: predicated region body
PF: predicated region fallthrough
CT: control target
= control target key end

     0   :  { %v11_v0 = vlaneseq  ;;  %s82_s0 = inlined_call_operand.<no memory space> [shape: s32[1,1], index: 0, kind: input, shape index: {}]   ;;  %s83_s1 = inlined_call_operand.hbm [shape: s32[1,8], index: 1, kind: output, shape index: {}]  }
   0x1   :  { %7 = vsyncpa [#allocation4], 0  ;;  %v13_v1 = vstv %s82_s0  ;;  %s56_s8 = smov [#allocation3]   ;;  %vm15_vm0 = vcmask 57344  }
   0x2   :  { %s23_s9 = sshll.u32 %s56_s8, 4  ;;  %v12_v2 = vand.u32 127, %v11_v0  ;;  %s24_s9 = int_to_ptr.vmem [resolvable:$true] %s23_s9 }
   0x3   :  { %s32_s10 = scalar_lea.vmem %s24_s9, 16  ;;  %s36_s11 = scalar_lea.vmem %s24_s9, 32 }
   0x4   :  { %v14_v3 = vadd.s32 %v13_v1, %v12_v2  ;;  %p33_p0 = scmp.ne.s32.totalorder %s24_s9, %s32_s10  ;;  %p37_p1 = scmp.lt.s32.totalorder %s24_s9, %s24_s9 }
   0x5   :  { %p38_p2 = scmp.lt.s32.totalorder %s36_s11, %s32_s10 }
   0x6   :  { %16 = vst.msk [vmem:[#allocation3] sm:$0x1] %vm15_vm0, %v14_v3 }
   0x7   :  { %p39_p3 = por %p38_p2, %p37_p1 }
   0x9   :  { %p40_p4 = pnand %p39_p3, %p33_p0 }
   0xb   :  { %43 = shalt.err (!%p40_p4)
}
   0xc   :  { %s44_s14 = scalar_lea.hbm %s83_s1, 16 }
   0xd   :  { %p45_p5 = scmp.ne.s32.totalorder %s83_s1, %s44_s14  ;;  %p48_p6 = scmp.lt.u32.totalorder %s44_s14, %s83_s1 }
   0xf   :  { %p50_p7 = pnand %p48_p6, %p45_p5 }
  0x11   :  { %53 = shalt.err (!%p50_p7)
}
  0x12   :  { %26 = dma.vmem_to_hbm [thread:$0]  %s24_s9, 16, %s83_s1, [#allocation4]  }
  0x13   :  { %54 = dma.done.wait [#allocation4], 16  }
  0x14   :  { %55 = vsyncadd [#allocation4], 4294967280 }
  0x15   :  { %30 = vsyncpa [#allocation4], 1 }

</bundles_post_ra>
